<compile_context>
chip_gen: v5e
topology: v5e:2x2
jax: 0.10.0
libtpu: 0.0.40
codegen_flags: <defaults>
</compile_context>

<pallas_src>
import jax
import jax.numpy as jnp
from jax.experimental import pallas as pl
from jax.experimental.pallas import tpu as pltpu


# ----------------------------------------------------------------------------
# helpers
# ----------------------------------------------------------------------------
def _coefs(delta_t, tau_syn, tau_mem):
    """[alpha, beta, 1-beta] as a (3,) f32 array (computed outside the kernel)."""
    alpha = jnp.exp(-delta_t / tau_syn)
    beta = jnp.exp(-delta_t / tau_mem)
    return jnp.stack([alpha, beta, 1.0 - beta]).astype(jnp.float32)


def _pick_block(dim, unit, cap):
    """Full extent if it fits `cap`, else the largest multiple of `unit` <= cap."""
    if dim <= cap:
        return dim
    return max(unit, (cap // unit) * unit)


# ----------------------------------------------------------------------------
# single-step kernel (matches ReadoutLayer.forward)
# ----------------------------------------------------------------------------
def readout_step_kernel(coefs_ref, mem_ref, syn_ref, x_ref,
                        new_mem_ref, new_syn_ref):
    alpha = coefs_ref[0]
    beta = coefs_ref[1]
    one_minus_beta = coefs_ref[2]

    syn = syn_ref[...]                               # old syn, loaded once
    new_syn_ref[...] = alpha * syn + x_ref[...]
    new_mem_ref[...] = beta * mem_ref[...] + one_minus_beta * syn


def _readout_step(mem, syn, x, delta_t, tau_syn, tau_mem,
                  *, block_b=256, block_h=1024):
    B, H = x.shape
    coefs = _coefs(delta_t, tau_syn, tau_mem)

    tb = _pick_block(B, 8, block_b)
    th = _pick_block(H, 128, block_h)
    grid = (pl.cdiv(B, tb), pl.cdiv(H, th))

    new_mem, new_syn = pl.pallas_call(
        readout_step_kernel,
        out_shape=(
            jax.ShapeDtypeStruct((B, H), jnp.float32),
            jax.ShapeDtypeStruct((B, H), jnp.float32),
        ),
        grid=grid,
        in_specs=[
            pl.BlockSpec(memory_space=pltpu.SMEM),               # coefs (3,)
            pl.BlockSpec((tb, th), lambda i, j: (i, j)),          # mem
            pl.BlockSpec((tb, th), lambda i, j: (i, j)),          # syn
            pl.BlockSpec((tb, th), lambda i, j: (i, j)),          # x
        ],
        out_specs=(
            pl.BlockSpec((tb, th), lambda i, j: (i, j)),          # new_mem
            pl.BlockSpec((tb, th), lambda i, j: (i, j)),          # new_syn
        ),
        # in-place update: mem -> new_mem, syn -> new_syn
        input_output_aliases={1: 0, 2: 1},
        compiler_params=pltpu.CompilerParams(
            dimension_semantics=("parallel", "parallel")),
    )(coefs, mem, syn, x)
    return new_mem, new_syn


def readout_layer_forward(state, x, delta_t, tau_syn, tau_mem):
    """state: (B, 2H) = [mem | syn], x: (B, H)  ->  (next_state, out).

    Matches the PyTorch module's forward exactly. The lane-concatenated state
    is split / re-concatenated in the wrapper so the kernel itself only sees
    lane-dense (B, H) blocks.
    """
    B, H2 = state.shape
    H = x.shape[-1]
    assert H2 == 2 * H
    mem = state[:, :H]
    syn = state[:, H:]
    new_mem, new_syn = _readout_step(mem, syn, x, delta_t, tau_syn, tau_mem)
    next_state = jnp.concatenate([new_mem, new_syn], axis=-1)
    return next_state, new_mem                      # out aliases new_mem (no 2nd write)


# ----------------------------------------------------------------------------
# time-fused kernel: T timesteps in one pallas_call, state resident in VMEM
# ----------------------------------------------------------------------------
def readout_scan_kernel(coefs_ref, mem0_ref, syn0_ref, x_ref,
                        out_ref, mem_f_ref, syn_f_ref,
                        mem_sc, syn_sc):
    t = pl.program_id(2)
    alpha = coefs_ref[0]
    beta = coefs_ref[1]
    one_minus_beta = coefs_ref[2]

    @pl.when(t == 0)
    def _():
        mem_sc[...] = mem0_ref[...]
        syn_sc[...] = syn0_ref[...]

    mem = mem_sc[...]
    syn = syn_sc[...]
    new_syn = alpha * syn + x_ref[...]
    new_mem = beta * mem + one_minus_beta * syn

    out_ref[...] = new_mem
    mem_sc[...] = new_mem
    syn_sc[...] = new_syn

    @pl.when(t == pl.num_programs(2) - 1)
    def _():
        mem_f_ref[...] = new_mem
        syn_f_ref[...] = new_syn


def readout_layer_scan(state, xs, delta_t, tau_syn, tau_mem,
                       *, block_b=128, block_h=1024):
    """Apply the readout over T timesteps in one kernel.

    state: (B, 2H) initial [mem | syn];  xs: (T, B, H) inputs.
    Returns (final_state (B, 2H), outs (T, B, H)) -- identical to calling
    readout_layer_forward T times in a loop.
    """
    T, B, H = xs.shape
    assert state.shape == (B, 2 * H)
    mem0 = state[:, :H]
    syn0 = state[:, H:]
    coefs = _coefs(delta_t, tau_syn, tau_mem)

    tb = _pick_block(B, 8, block_b)
    th = _pick_block(H, 128, block_h)
    grid = (pl.cdiv(B, tb), pl.cdiv(H, th), T)      # time is the innermost axis

    outs, mem_f, syn_f = pl.pallas_call(
        readout_scan_kernel,
        out_shape=(
            jax.ShapeDtypeStruct((T, B, H), jnp.float32),
            jax.ShapeDtypeStruct((B, H), jnp.float32),
            jax.ShapeDtypeStruct((B, H), jnp.float32),
        ),
        grid=grid,
        in_specs=[
            pl.BlockSpec(memory_space=pltpu.SMEM),                      # coefs
            pl.BlockSpec((tb, th), lambda b, h, t: (b, h)),             # mem0
            pl.BlockSpec((tb, th), lambda b, h, t: (b, h)),             # syn0
            pl.BlockSpec((None, tb, th), lambda b, h, t: (t, b, h)),    # xs[t]
        ],
        out_specs=(
            pl.BlockSpec((None, tb, th), lambda b, h, t: (t, b, h)),    # outs[t]
            pl.BlockSpec((tb, th), lambda b, h, t: (b, h)),             # final mem
            pl.BlockSpec((tb, th), lambda b, h, t: (b, h)),             # final syn
        ),
        scratch_shapes=[
            pltpu.VMEM((tb, th), jnp.float32),                          # resident mem
            pltpu.VMEM((tb, th), jnp.float32),                          # resident syn
        ],
        compiler_params=pltpu.CompilerParams(
            dimension_semantics=("parallel", "parallel", "arbitrary")),
    )(coefs, mem0, syn0, xs)

    final_state = jnp.concatenate([mem_f, syn_f], axis=-1)
    return final_state, outs


# ----------------------------------------------------------------------------
# demo + reference check
# ----------------------------------------------------------------------------
def _ref_step(state, x, delta_t, tau_syn, tau_mem):
    alpha = jnp.exp(-delta_t / tau_syn)
    beta = jnp.exp(-delta_t / tau_mem)
    H = x.shape[-1]
    mem, syn = state[:, :H], state[:, H:]
    new_syn = alpha * syn + x
    new_mem = beta * mem + (1.0 - beta) * syn
    return jnp.concatenate([new_mem, new_syn], axis=-1), new_mem


if __name__ == "__main__":
    # deterministic "module init": nb_hidden, taus, time_step -> delta_t
    nb_hidden = 32
    batch = 2
    T = 8
    tau_mem = 2.0
    tau_syn = 1.0
    time_step = 2.0
    delta_t = 1.0 / time_step        # learnable scalar in the torch module

    key = jax.random.PRNGKey(0)
    k1, k2, k3 = jax.random.split(key, 3)
    state = jax.random.normal(k1, (batch, 2 * nb_hidden), dtype=jnp.float32)
    x = jax.random.normal(k2, (batch, nb_hidden), dtype=jnp.float32)
    xs = jax.random.normal(k3, (T, batch, nb_hidden), dtype=jnp.float32)

    step_fn = jax.jit(readout_layer_forward)
    scan_fn = jax.jit(readout_layer_scan)

    # --- single-step (module forward) --------------------------------------
    next_state, out = step_fn(state, x, delta_t, tau_syn, tau_mem)
    jax.block_until_ready((next_state, out))

    next_state_r, out_r = _ref_step(state, x, delta_t, tau_syn, tau_mem)
    assert jnp.allclose(next_state, next_state_r, atol=1e-6, rtol=1e-6)
    assert jnp.allclose(out, out_r, atol=1e-6, rtol=1e-6)

    # --- fused time scan -----------------------------------------------------
    final_state, outs = scan_fn(state, xs, delta_t, tau_syn, tau_mem)
    jax.block_until_ready((final_state, outs))

    st_r = state
    outs_r = []
    for t in range(T):
        st_r, o_r = _ref_step(st_r, xs[t], delta_t, tau_syn, tau_mem)
        outs_r.append(o_r)
    outs_r = jnp.stack(outs_r, axis=0)
    assert jnp.allclose(final_state, st_r, atol=1e-6, rtol=1e-6)
    assert jnp.allclose(outs, outs_r, atol=1e-6, rtol=1e-6)

    print("KERNEL_OK")
</pallas_src>

<mosaic_0001>
module attributes {stable_mosaic.version = 11 : i64} {
  func.func @readout_step_kernel(%arg0: i32, %arg1: i32, %arg2: memref<3xf32, #tpu.memory_space<smem>>, %arg3: memref<2x32xf32, #tpu.memory_space<vmem>>, %arg4: memref<2x32xf32, #tpu.memory_space<vmem>>, %arg5: memref<2x32xf32, #tpu.memory_space<vmem>>, %arg6: memref<2x32xf32, #tpu.memory_space<vmem>>, %arg7: memref<2x32xf32, #tpu.memory_space<vmem>>) attributes {dimension_semantics = [#tpu.dimension_semantics<parallel>, #tpu.dimension_semantics<parallel>], iteration_bounds = array<i64: 1, 1>, scalar_prefetch = 0 : i64, scratch_operands = 0 : i64, tpu.core_type = #tpu.core_type<tc>, window_params = [{transform_indices = @transform_0, window_bounds = array<i64: 3>}, {transform_indices = @transform_1, window_bounds = array<i64: 2, 32>}, {transform_indices = @transform_2, window_bounds = array<i64: 2, 32>}, {transform_indices = @transform_3, window_bounds = array<i64: 2, 32>}, {transform_indices = @transform_4, window_bounds = array<i64: 2, 32>}, {transform_indices = @transform_5, window_bounds = array<i64: 2, 32>}]} {
    %c0 = arith.constant 0 : index
    %0 = memref.load %arg2[%c0] : memref<3xf32, #tpu.memory_space<smem>>
    %c1 = arith.constant 1 : index
    %1 = memref.load %arg2[%c1] : memref<3xf32, #tpu.memory_space<smem>>
    %c2 = arith.constant 2 : index
    %2 = memref.load %arg2[%c2] : memref<3xf32, #tpu.memory_space<smem>>
    %c0_0 = arith.constant 0 : index
    %c0_1 = arith.constant 0 : index
    %3 = vector.load %arg4[%c0_0, %c0_1] : memref<2x32xf32, #tpu.memory_space<vmem>>, vector<2x32xf32>
    %4 = vector.broadcast %0 : f32 to vector<2x32xf32>
    %5 = arith.mulf %4, %3 : vector<2x32xf32>
    %c0_2 = arith.constant 0 : index
    %c0_3 = arith.constant 0 : index
    %6 = vector.load %arg5[%c0_2, %c0_3] : memref<2x32xf32, #tpu.memory_space<vmem>>, vector<2x32xf32>
    %7 = arith.addf %5, %6 : vector<2x32xf32>
    %c0_4 = arith.constant 0 : index
    %c0_5 = arith.constant 0 : index
    %8 = vector.load %arg7[%c0_4, %c0_5] : memref<2x32xf32, #tpu.memory_space<vmem>>, vector<2x32xf32>
    tpu.vector_store %arg7[%c0_4, %c0_5], %7 {strides = array<i32>} : memref<2x32xf32, #tpu.memory_space<vmem>>, vector<2x32xf32>,
    %c0_6 = arith.constant 0 : index
    %c0_7 = arith.constant 0 : index
    %9 = vector.load %arg3[%c0_6, %c0_7] : memref<2x32xf32, #tpu.memory_space<vmem>>, vector<2x32xf32>
    %10 = vector.broadcast %1 : f32 to vector<2x32xf32>
    %11 = arith.mulf %10, %9 : vector<2x32xf32>
    %12 = vector.broadcast %2 : f32 to vector<2x32xf32>
    %13 = arith.mulf %12, %3 : vector<2x32xf32>
    %14 = arith.addf %11, %13 : vector<2x32xf32>
    %c0_8 = arith.constant 0 : index
    %c0_9 = arith.constant 0 : index
    %15 = vector.load %arg6[%c0_8, %c0_9] : memref<2x32xf32, #tpu.memory_space<vmem>>, vector<2x32xf32>
    tpu.vector_store %arg6[%c0_8, %c0_9], %14 {strides = array<i32>} : memref<2x32xf32, #tpu.memory_space<vmem>>, vector<2x32xf32>,
    return
  }
  func.func @transform_0(%arg0: i32, %arg1: i32) -> i32 {
    %c0_i32 = arith.constant 0 : i32
    %c0_i32_0 = arith.constant 0 : i32
    return %c0_i32 : i32
  }
  func.func @transform_1(%arg0: i32, %arg1: i32) -> (i32, i32) {
    %c0_i32 = arith.constant 0 : i32
    return %arg0, %arg1 : i32, i32
  }
  func.func @transform_2(%arg0: i32, %arg1: i32) -> (i32, i32) {
    %c0_i32 = arith.constant 0 : i32
    return %arg0, %arg1 : i32, i32
  }
  func.func @transform_3(%arg0: i32, %arg1: i32) -> (i32, i32) {
    %c0_i32 = arith.constant 0 : i32
    return %arg0, %arg1 : i32, i32
  }
  func.func @transform_4(%arg0: i32, %arg1: i32) -> (i32, i32) {
    %c0_i32 = arith.constant 0 : i32
    return %arg0, %arg1 : i32, i32
  }
  func.func @transform_5(%arg0: i32, %arg1: i32) -> (i32, i32) {
    %c0_i32 = arith.constant 0 : i32
    return %arg0, %arg1 : i32, i32
  }
}

</mosaic_0001>

<bundles_post_ra>
// kernel: readout_layer_forward.1
= control target key start
LH: loop header
LB: loop body
LE: loop exit
PB: predicated region body
PF: predicated region fallthrough
CT: control target
= control target key end

     0   :  { %11 = vsyncpa [#allocation3], 0  ;;  %s75_s21 = smov [#allocation2]   ;;  %s124_s0 = inlined_call_operand.vmem [shape: f32[3], index: 0, kind: input, shape index: {}]   ;;  %s125_s1 = inlined_call_operand.vmem [shape: f32[2,32], index: 1, kind: input, shape index: {}, may-alias: {1,4}]   ;;  %s126_s2 = inlined_call_operand.vmem [shape: f32[2,32], index: 2, kind: input, shape index: {}, may-alias: {2,5}]   ;;  %s127_s3 = inlined_call_operand.vmem [shape: f32[2,32], index: 3, kind: input, shape index: {}]   ;;  %s128_s4 = inlined_call_operand.vmem [shape: f32[2,32], index: 4, kind: output, shape index: {0}, may-alias: {1,4}]   ;;  %s129_s5 = inlined_call_operand.vmem [shape: f32[2,32], index: 5, kind: output, shape index: {1}, may-alias: {2,5}]  }
   0x1   :  { %s17_s20 = sshll.u32 %s124_s0, 4  ;;  %s18_s20 = int_to_ptr.vmem [resolvable:$true] %s17_s20 }
   0x2   :  { %20 = dma.vmem_to_smem %s18_s20, 16, %s75_s21, [#allocation3]  }
   0x3   :  { %73 = dma.done.wait [#allocation3], 16  }
   0x4   :  { %74 = vsyncadd [#allocation3], 4294967280 }
   0x5   :  { %31 = sfence }
   0x6   :  { %s32_s22 = sld [smem:[#allocation2]]  ;;  %v35_v0 = vld [vmem:[%s126_s2] sm:$0x3]  ;;  %vm40_vm0 = vcmask 254976  }
   0x7   :  { %s59_s23 = sld [smem:[#allocation2 + $0x2]]  ;;  %v38_v2 = vld [vmem:[%s127_s3] sm:$0x3] }
   0x8   :  { %s58_s24 = sld [smem:[#allocation2 + $0x1]]  ;;  %v42_v3 = vld [vmem:[%s125_s1] sm:$0x3] }
   0xc   :  { %v36_v1 = vstv %s32_s22 }
   0xd   :  { %v37_v4 = vmul.f32 %v36_v1, %v35_v0  ;;  %v45_v5 = vstv %s59_s23 }
   0xe   :  { %v46_v6 = vmul.f32 %v45_v5, %v35_v0  ;;  %v43_v7 = vstv %s58_s24 }
   0xf   :  { %v39_v8 = vadd.f32 %v38_v2, %v37_v4  ;;  %v44_v9 = vmul.f32 %v43_v7, %v42_v3 }
  0x11   :  { %41 = vst.msk [vmem:[%s129_s5] sm:$0x3] %vm40_vm0, %v39_v8  ;;  %v47_v10 = vadd.f32 %v46_v6, %v44_v9 }
  0x13   :  { %48 = vst.msk [vmem:[%s128_s4] sm:$0x3] %vm40_vm0, %v47_v10 }
  0x14   :  { %57 = vsyncpa [#allocation3], 1 }

</bundles_post_ra>
